<compile_context>
chip_gen: v7x
topology: tpu7x:2x2x1
jax: 0.10.0
libtpu: 0.0.40
codegen_flags: <defaults>
</compile_context>

<pallas_src>
import functools

import jax
import jax.numpy as jnp
from jax.experimental import pallas as pl
from jax.experimental.pallas import tpu as pltpu

N_ACTIONS = 2
N_FEATURE = 16                      # synthetic stand-in for X_original_train.shape[1]
N_STATES = 960 + N_FEATURE          # = 976, as in the reference module
HIDDEN = 100
HIDDEN_PAD = 128                    # 100 -> 128, lane-dense hidden dim (zero-padded, exact)

DEFAULT_TILE_B = 1024               # mem-bound tiling: ~85% of HBM roofline at 512-1024 rows
_SPLIT_FOR_DUAL_TC = 512            # batches >= this get >=2 grid steps (v7x dual TC)


def _round_up(n, m):
    return (n + m - 1) // m * m


def _choose_batch_tiling(B, max_tile):
    """Pick (tb, b_pad) so padding stays tiny and the grid has >=2 steps for big B."""
    n = pl.cdiv(B, max_tile)
    if n == 1 and B >= _SPLIT_FOR_DUAL_TC:
        n = 2                        # let both v7x TensorCores get a tile
    tb = _round_up(pl.cdiv(B, n), 8)
    return tb, n * tb


def _net_kernel(x_ref, w1_ref, b1_ref, w2_ref, b2_ref, o_ref):
    # x arrives as f32 (raw HBM bytes); cast to bf16 on the VPU for the MXU.
    x = x_ref[...].astype(jnp.bfloat16)
    # fc1: (TB, 976)bf16 @ (976, 128)bf16 -> f32 accumulate on the MXU
    h = jnp.dot(x, w1_ref[...], preferred_element_type=jnp.float32)
    # bias add + ReLU in f32 on the VPU (padded hidden columns stay exactly 0)
    h = jnp.maximum(h + b1_ref[...], 0.0)
    # out: (TB, 128)bf16 @ (128, 2)bf16 -> f32
    o = jnp.dot(h.astype(jnp.bfloat16), w2_ref[...],
                preferred_element_type=jnp.float32)
    o_ref[...] = (o + b2_ref[...]).astype(o_ref.dtype)


def prepare_params(w1, b1, w2, b2):
    """Zero-pad hidden dim 100->128 and cast matmul operands to bf16.

    Zero padding is exact: padded hidden columns have zero weight/bias and
    ReLU(0) = 0, so they contribute nothing to the second matmul.
    """
    w1p = jnp.zeros((N_STATES, HIDDEN_PAD), jnp.float32).at[:, :HIDDEN].set(w1)
    b1p = jnp.zeros((1, HIDDEN_PAD), jnp.float32).at[:, :HIDDEN].set(b1)
    w2p = jnp.zeros((HIDDEN_PAD, N_ACTIONS), jnp.float32).at[:HIDDEN, :].set(w2)
    return w1p.astype(jnp.bfloat16), b1p, w2p.astype(jnp.bfloat16), b2


@functools.partial(jax.jit, static_argnames=("tile_b",))
def net_forward(x, w1p, b1p, w2p, b2, *, tile_b=DEFAULT_TILE_B):
    """x: (B, N_STATES) f32; w1p/w2p padded bf16; b1p/b2 f32. Returns (B, N_ACTIONS) f32."""
    B = x.shape[0]
    tb, b_pad = _choose_batch_tiling(B, tile_b)

    # Only pad the batch when B isn't already a tile multiple (no feature-dim
    # padding, no dtype cast -> x usually streams straight from HBM).
    if b_pad != B:
        xp = jnp.zeros((b_pad, N_STATES), x.dtype).at[:B].set(x)
    else:
        xp = x

    # VMEM footprint: double-buffered f32 x tiles + f32 out tiles + resident weights.
    x_tile_bytes = tb * N_STATES * 4
    out_tile_bytes = tb * N_ACTIONS * 4
    w_bytes = (N_STATES * HIDDEN_PAD * 2 + HIDDEN_PAD * 4
               + HIDDEN_PAD * N_ACTIONS * 2 + N_ACTIONS * 4)
    vmem_limit = min(2 * (x_tile_bytes + out_tile_bytes + w_bytes) + (6 << 20),
                     30 << 20)  # stay under v7x's 32 MiB scoped default

    # TODO(synk): for repeated tiny-batch (DQN-style) inference, pin the weights
    # across calls via a cross-pallas_call prefetch (sem + VMEM ref outputs,
    # has_side_effects=True) instead of re-DMAing ~0.25 MiB per call.
    out = pl.pallas_call(
        _net_kernel,
        out_shape=jax.ShapeDtypeStruct((b_pad, N_ACTIONS), jnp.float32),
        grid=(b_pad // tb,),
        in_specs=[
            # x tiled over the batch axis; K=976 is a legal full-dim block.
            pl.BlockSpec((tb, N_STATES), lambda i: (i, 0)),
            # Weights/biases: full blocks with constant index_map -> VMEM-resident.
            pl.BlockSpec((N_STATES, HIDDEN_PAD), lambda i: (0, 0)),
            pl.BlockSpec((1, HIDDEN_PAD), lambda i: (0, 0)),
            pl.BlockSpec((HIDDEN_PAD, N_ACTIONS), lambda i: (0, 0)),
            pl.BlockSpec((1, N_ACTIONS), lambda i: (0, 0)),
        ],
        out_specs=pl.BlockSpec((tb, N_ACTIONS), lambda i: (i, 0)),
        compiler_params=pltpu.CompilerParams(
            # Batch tiles are independent -> shard across v7x's two TensorCores.
            dimension_semantics=("parallel",),
            vmem_limit_bytes=vmem_limit,
        ),
    )(xp, w1p, b1p, w2p, b2)
    return out[:B]


def init_params(key):
    k1, k2, k3, k4 = jax.random.split(key, 4)
    # fc1.weight.data.normal_(0, 0.1)  -> stored transposed as (in, out)
    w1 = 0.1 * jax.random.normal(k1, (N_STATES, HIDDEN), dtype=jnp.float32)
    # PyTorch Linear default bias: U(-1/sqrt(fan_in), 1/sqrt(fan_in))
    b1 = jax.random.uniform(
        k2, (1, HIDDEN), dtype=jnp.float32,
        minval=-1.0 / jnp.sqrt(N_STATES), maxval=1.0 / jnp.sqrt(N_STATES))
    # out.weight.data.normal_(0, 0.1)
    w2 = 0.1 * jax.random.normal(k3, (HIDDEN, N_ACTIONS), dtype=jnp.float32)
    b2 = jax.random.uniform(
        k4, (1, N_ACTIONS), dtype=jnp.float32,
        minval=-1.0 / jnp.sqrt(HIDDEN), maxval=1.0 / jnp.sqrt(HIDDEN))
    return w1, b1, w2, b2


def _reference(x, w1, b1, w2, b2):
    # bf16-operand-consistent pure-JAX reference (same rounding as the kernel).
    bf = lambda a: a.astype(jnp.bfloat16).astype(jnp.float32)
    h = jnp.maximum(bf(x) @ bf(w1) + b1, 0.0)
    return bf(h) @ bf(w2) + b2


if __name__ == "__main__":
    key = jax.random.PRNGKey(0)
    kx, kx2, kp = jax.random.split(key, 3)
    w1, b1, w2, b2 = init_params(kp)
    params = prepare_params(w1, b1, w2, b2)

    # Tiny DQN-style batch (B=2): exercises the small-batch path (tb=8).
    x_small = jax.random.normal(kx, (2, N_STATES), dtype=jnp.float32)
    out_small = net_forward(x_small, *params)
    jax.block_until_ready(out_small)
    assert out_small.shape == (2, N_ACTIONS)
    ref_small = _reference(x_small, w1, b1, w2, b2)
    assert jnp.allclose(out_small, ref_small, atol=1e-2, rtol=1e-2), (out_small, ref_small)

    # Awkward batch (B=300): exercises the adaptive tiling (tb=304, minimal padding).
    x_mid = jax.random.normal(kx2, (300, N_STATES), dtype=jnp.float32)
    out_mid = net_forward(x_mid, *params)
    jax.block_until_ready(out_mid)
    assert out_mid.shape == (300, N_ACTIONS)
    ref_mid = _reference(x_mid, w1, b1, w2, b2)
    assert jnp.allclose(out_mid, ref_mid, atol=1e-2, rtol=1e-2)

    print("KERNEL_OK")
</pallas_src>

<mosaic_0001>
module attributes {stable_mosaic.version = 11 : i64} {
  func.func @_net_kernel(%arg0: i32, %arg1: memref<8x976xf32, #tpu.memory_space<vmem>>, %arg2: memref<976x128xbf16, #tpu.memory_space<vmem>>, %arg3: memref<1x128xf32, #tpu.memory_space<vmem>>, %arg4: memref<128x2xbf16, #tpu.memory_space<vmem>>, %arg5: memref<1x2xf32, #tpu.memory_space<vmem>>, %arg6: memref<8x2xf32, #tpu.memory_space<vmem>>) attributes {dimension_semantics = [#tpu.dimension_semantics<parallel>], iteration_bounds = array<i64: 1>, scalar_prefetch = 0 : i64, scratch_operands = 0 : i64, tpu.core_type = #tpu.core_type<tc>, window_params = [{transform_indices = @transform_0, window_bounds = array<i64: 8, 976>}, {pipeline_mode = #tpu.pipeline_mode<synchronous>, transform_indices = @transform_1, window_bounds = array<i64: 976, 128>}, {pipeline_mode = #tpu.pipeline_mode<synchronous>, transform_indices = @transform_2, window_bounds = array<i64: 1, 128>}, {pipeline_mode = #tpu.pipeline_mode<synchronous>, transform_indices = @transform_3, window_bounds = array<i64: 128, 2>}, {pipeline_mode = #tpu.pipeline_mode<synchronous>, transform_indices = @transform_4, window_bounds = array<i64: 1, 2>}, {transform_indices = @transform_5, window_bounds = array<i64: 8, 2>}]} {
    %c0 = arith.constant 0 : index
    %c0_0 = arith.constant 0 : index
    %0 = vector.load %arg1[%c0, %c0_0] : memref<8x976xf32, #tpu.memory_space<vmem>>, vector<8x976xf32>
    %1 = arith.truncf %0 : vector<8x976xf32> to vector<8x976xbf16>
    %c0_1 = arith.constant 0 : index
    %c0_2 = arith.constant 0 : index
    %2 = vector.load %arg2[%c0_1, %c0_2] : memref<976x128xbf16, #tpu.memory_space<vmem>>, vector<976x128xbf16>
    %cst = arith.constant dense<0.000000e+00> : vector<8x128xf32>
    %3 = tpu.matmul %1, %2, %cst {dimension_numbers = #tpu.dot_dimension_numbers<[1], [0], [0], [1], [0, 0, 1, 1], [], []>} : vector<8x976xbf16>, vector<976x128xbf16>, vector<8x128xf32> -> vector<8x128xf32>
    %c0_3 = arith.constant 0 : index
    %c0_4 = arith.constant 0 : index
    %4 = vector.load %arg3[%c0_3, %c0_4] : memref<1x128xf32, #tpu.memory_space<vmem>>, vector<1x128xf32>
    %5 = vector.broadcast %4 : vector<1x128xf32> to vector<8x128xf32>
    %6 = arith.addf %3, %5 : vector<8x128xf32>
    %cst_5 = arith.constant 0.000000e+00 : f32
    %7 = vector.broadcast %cst_5 : f32 to vector<8x128xf32>
    %8 = arith.maximumf %6, %7 : vector<8x128xf32>
    %9 = arith.truncf %8 : vector<8x128xf32> to vector<8x128xbf16>
    %c0_6 = arith.constant 0 : index
    %c0_7 = arith.constant 0 : index
    %10 = vector.load %arg4[%c0_6, %c0_7] : memref<128x2xbf16, #tpu.memory_space<vmem>>, vector<128x2xbf16>
    %cst_8 = arith.constant dense<0.000000e+00> : vector<8x2xf32>
    %11 = tpu.matmul %9, %10, %cst_8 {dimension_numbers = #tpu.dot_dimension_numbers<[1], [0], [0], [1], [0, 0, 1, 1], [], []>} : vector<8x128xbf16>, vector<128x2xbf16>, vector<8x2xf32> -> vector<8x2xf32>
    %c0_9 = arith.constant 0 : index
    %c0_10 = arith.constant 0 : index
    %12 = vector.load %arg5[%c0_9, %c0_10] : memref<1x2xf32, #tpu.memory_space<vmem>>, vector<1x2xf32>
    %13 = vector.broadcast %12 : vector<1x2xf32> to vector<8x2xf32>
    %14 = arith.addf %11, %13 : vector<8x2xf32>
    %c0_11 = arith.constant 0 : index
    %c0_12 = arith.constant 0 : index
    %15 = vector.load %arg6[%c0_11, %c0_12] : memref<8x2xf32, #tpu.memory_space<vmem>>, vector<8x2xf32>
    tpu.vector_store %arg6[%c0_11, %c0_12], %14 {strides = array<i32>} : memref<8x2xf32, #tpu.memory_space<vmem>>, vector<8x2xf32>,
    return
  }
  func.func @transform_0(%arg0: i32) -> (i32, i32) {
    %c0_i32 = arith.constant 0 : i32
    %c0_i32_0 = arith.constant 0 : i32
    return %arg0, %c0_i32 : i32, i32
  }
  func.func @transform_1(%arg0: i32) -> (i32, i32) {
    %c0_i32 = arith.constant 0 : i32
    %c0_i32_0 = arith.constant 0 : i32
    %c0_i32_1 = arith.constant 0 : i32
    return %c0_i32, %c0_i32_0 : i32, i32
  }
  func.func @transform_2(%arg0: i32) -> (i32, i32) {
    %c0_i32 = arith.constant 0 : i32
    %c0_i32_0 = arith.constant 0 : i32
    %c0_i32_1 = arith.constant 0 : i32
    return %c0_i32, %c0_i32_0 : i32, i32
  }
  func.func @transform_3(%arg0: i32) -> (i32, i32) {
    %c0_i32 = arith.constant 0 : i32
    %c0_i32_0 = arith.constant 0 : i32
    %c0_i32_1 = arith.constant 0 : i32
    return %c0_i32, %c0_i32_0 : i32, i32
  }
  func.func @transform_4(%arg0: i32) -> (i32, i32) {
    %c0_i32 = arith.constant 0 : i32
    %c0_i32_0 = arith.constant 0 : i32
    %c0_i32_1 = arith.constant 0 : i32
    return %c0_i32, %c0_i32_0 : i32, i32
  }
  func.func @transform_5(%arg0: i32) -> (i32, i32) {
    %c0_i32 = arith.constant 0 : i32
    %c0_i32_0 = arith.constant 0 : i32
    return %arg0, %c0_i32 : i32, i32
  }
}

</mosaic_0001>

<bundles_post_ra>
// kernel: net_forward.1
= control target key start
LH: loop header
LB: loop body
LE: loop exit
PB: predicated region body
PF: predicated region fallthrough
CT: control target
= control target key end

     0   :  { %10 = vsyncpa [#allocation3], 0  ;;  %s1096_s18 = smov [#allocation2]   ;;  %s1214_s0 = inlined_call_operand.vmem [shape: f32[8,976], index: 0, kind: input, shape index: {}]   ;;  %s1215_s1 = inlined_call_operand.hbm [shape: bf16[976,128], index: 1, kind: input, shape index: {}]   ;;  %s1216_s2 = inlined_call_operand.vmem [shape: f32[1,128], index: 2, kind: input, shape index: {}]   ;;  %s1217_s3 = inlined_call_operand.vmem [shape: bf16[128,2], index: 3, kind: input, shape index: {}]   ;;  %s1218_s4 = inlined_call_operand.vmem [shape: f32[1,2], index: 4, kind: input, shape index: {}]   ;;  %s1219_s5 = inlined_call_operand.vmem [shape: f32[8,2], index: 5, kind: output, shape index: {}]  }
   0x1   :  { %s18_s19 = sshll.u32 %s1096_s18, 4  ;;  %s1072_s22 = scalar_lea.hbm %s1215_s1, 7808  ;;  %s19_s19 = int_to_ptr.vmem [resolvable:$true] %s18_s19 }
   0x2   :  { %p1073_p0 = scmp.ne.s32.totalorder %s1215_s1, %s1072_s22  ;;  %p1076_p1 = scmp.lt.u32.totalorder %s1072_s22, %s1215_s1 }
   0x4   :  { %p1078_p2 = pnand %p1076_p1, %p1073_p0 }
   0x6   :  { %1081 = shalt.err (!%p1078_p2)
}
   0x7   :  { %s1082_s27 = scalar_lea.vmem %s19_s19, 7808  ;;  %p1087_p4 = scmp.lt.s32.totalorder %s19_s19, %s19_s19 }
   0x8   :  { %p1083_p3 = scmp.ne.s32.totalorder %s19_s19, %s1082_s27  ;;  %p1088_p5 = scmp.lt.s32.totalorder %s1082_s27, %s1082_s27 }
   0xa   :  { %p1089_p6 = por %p1088_p5, %p1087_p4 }
   0xc   :  { %p1090_p7 = pnand %p1089_p6, %p1083_p3 }
   0xe   :  { %1093 = shalt.err (!%p1090_p7)
}
   0xf   :  { %s1097_s28 = smov 64   ;;  %s1098_s29 = smov 4  }
  0x10   :  { %24 = dma.hbm_to_vmem [thread:$0]  %s1215_s1, 7808, %s19_s19, [#allocation3], %s1097_s28, %s1097_s28, %s1098_s29  }
  0x11   :  { %1094 = dma.done.wait [#allocation3], 7808  }
  0x12   :  { %1095 = vsyncadd [#allocation3], 4294959488  ;;  %v1003_v0 = vld [vmem:[#allocation2 + $0x40] sm:$0xff]   ;;  %v1007_v4 = vld [vmem:[#allocation2 + $0x48] sm:$0xff]   ;;  %v1099_v41 = vmov 0   ;;  %vm546_vm0 = vcmask 654336  }
  0x13   :  { %v1004_v1 = vld [vmem:[#allocation2 + $0xc0] sm:$0xff]   ;;  %902 = vmatprep.subr.bf16.mxu0 %v1003_v0  ;;  %v1008_v5 = vld [vmem:[#allocation2 + $0xc8] sm:$0xff]   ;;  %v1011_v8 = vld [vmem:[#allocation2 + $0x50] sm:$0xff]   ;;  %vm1101_vm1 = vmmov 0   ;;  %vm823_vm2 = vcmask 15360  }
  0x14   :  { %v1005_v2 = vld [vmem:[#allocation2] sm:$0xff]   ;;  %924 = vmatprep.subr.bf16.mxu1 %v1004_v1  ;;  %v1009_v6 = vld [vmem:[#allocation2 + $0x8] sm:$0xff]   ;;  %v1012_v9 = vld [vmem:[#allocation2 + $0xd0] sm:$0xff]  }
  0x15   :  { %v1006_v3 = vld [vmem:[#allocation2 + $0x80] sm:$0xff]   ;;  %903 = vmatpush3.bf16.msra.mxu0 %v1005_v2  ;;  %v1010_v7 = vld [vmem:[#allocation2 + $0x88] sm:$0xff]   ;;  %v1013_v10 = vld [vmem:[#allocation2 + $0x10] sm:$0xff]  }
  0x16   :  { %925 = vmatpush3.bf16.msra.mxu1 %v1006_v3  ;;  %904 = vmatprep.subr.bf16.mxu0 %v1007_v4  ;;  %v1014_v11 = vld [vmem:[#allocation2 + $0x90] sm:$0xff]   ;;  %v1015_v12 = vld [vmem:[#allocation2 + $0x58] sm:$0xff]   ;;  %v1019_v16 = vld [vmem:[#allocation2 + $0x60] sm:$0xff]  }
  0x17   :  { %926 = vmatprep.subr.bf16.mxu1 %v1008_v5  ;;  %v1016_v13 = vld [vmem:[#allocation2 + $0xd8] sm:$0xff]   ;;  %v1020_v17 = vld [vmem:[#allocation2 + $0xe0] sm:$0xff]   ;;  %v1023_v20 = vld [vmem:[#allocation2 + $0x68] sm:$0xff]  }
  0x18   :  { %v1017_v14 = vld [vmem:[#allocation2 + $0x18] sm:$0xff]   ;;  %v1021_v18 = vld [vmem:[#allocation2 + $0x20] sm:$0xff]   ;;  %v1024_v21 = vld [vmem:[#allocation2 + $0xe8] sm:$0xff]  }
  0x19   :  { %905 = vmatpush3.bf16.msra.mxu0 %v1009_v6  ;;  %v1018_v15 = vld [vmem:[#allocation2 + $0x98] sm:$0xff]   ;;  %v1022_v19 = vld [vmem:[#allocation2 + $0xa0] sm:$0xff]   ;;  %v1025_v22 = vld [vmem:[#allocation2 + $0x28] sm:$0xff]  }
  0x1a   :  { %927 = vmatpush3.bf16.msra.mxu1 %v1010_v7  ;;  %906 = vmatprep.subr.bf16.mxu0 %v1011_v8  ;;  %v1026_v23 = vld [vmem:[#allocation2 + $0xa8] sm:$0xff]   ;;  %v1027_v24 = vld [vmem:[#allocation2 + $0x70] sm:$0xff]   ;;  %v1031_v28 = vld [vmem:[#allocation2 + $0x78] sm:$0xff]  }
  0x1b   :  { %928 = vmatprep.subr.bf16.mxu1 %v1012_v9  ;;  %v1028_v25 = vld [vmem:[#allocation2 + $0xf0] sm:$0xff]   ;;  %v1032_v29 = vld [vmem:[#allocation2 + $0xf8] sm:$0xff]   ;;  %v36_v32 = vld [vmem:[%s1214_s0 + $0x8] sm:$0xff] }
  0x1c   :  { %v1029_v26 = vld [vmem:[#allocation2 + $0x30] sm:$0xff]   ;;  %v1033_v30 = vld [vmem:[#allocation2 + $0x38] sm:$0xff]   ;;  %v35_v34 = vld [vmem:[%s1214_s0] sm:$0xff]  ;;  %v44_v35 = vpack.c.bf16 %v36_v32, %v36_v32 }
  0x1d   :  { %907 = vmatpush3.bf16.msra.mxu0 %v1013_v10  ;;  %v1030_v27 = vld [vmem:[#allocation2 + $0xb0] sm:$0xff]   ;;  %v1034_v31 = vld [vmem:[#allocation2 + $0xb8] sm:$0xff]   ;;  %v43_v37 = vpack.c.bf16 %v35_v34, %v35_v34  ;;  %v1035_v40 = vld [vmem:[#allocation2 + $0x140] sm:$0xff]  }
  0x1e   :  { %929 = vmatpush3.bf16.msra.mxu1 %v1014_v11  ;;  %908 = vmatprep.subr.bf16.mxu0 %v1015_v12  ;;  %v38_v33 = vld [vmem:[%s1214_s0 + $0x18] sm:$0xff]  ;;  %v37_v38 = vld [vmem:[%s1214_s0 + $0x10] sm:$0xff]  ;;  %v1036_v42 = vld [vmem:[#allocation2 + $0x100] sm:$0xff]  }
  0x1f   :  { %930 = vmatprep.subr.bf16.mxu1 %v1016_v13  ;;  %v46_v36 = vpack.c.bf16 %v38_v33, %v38_v33  ;;  %v45_v39 = vpack.c.bf16 %v37_v38, %v37_v38  ;;  %582 = vmatprep.mubr.bf16.mxu0 %v44_v35  ;;  %v1037_v43 = vld [vmem:[#allocation2 + $0x180] sm:$0xff]   ;;  %v1038_v44 = vld [vmem:[#allocation2 + $0x148] sm:$0xff]   ;;  %v1041_v47 = vld [vmem:[#allocation2 + $0x150] sm:$0xff]  }
  0x20   :  { %v1039_v45 = vld [vmem:[#allocation2 + $0x108] sm:$0xff]   ;;  %v1042_v48 = vld [vmem:[#allocation2 + $0x110] sm:$0xff]   ;;  %v1044_v50 = vld [vmem:[#allocation2 + $0x158] sm:$0xff]  }
  0x21   :  { %909 = vmatpush3.bf16.msra.mxu0 %v1017_v14  ;;  %622 = vmatprep.mubr.bf16.mxu1 %v46_v36  ;;  %v1040_v46 = vld [vmem:[#allocation2 + $0x188] sm:$0xff]   ;;  %v1043_v49 = vld [vmem:[#allocation2 + $0x190] sm:$0xff]   ;;  %v1045_v51 = vld [vmem:[#allocation2 + $0x118] sm:$0xff]  }
  0x22   :  { %931 = vmatpush3.bf16.msra.mxu1 %v1018_v15  ;;  %910 = vmatprep.subr.bf16.mxu0 %v1019_v16  ;;  %v1046_v52 = vld [vmem:[#allocation2 + $0x198] sm:$0xff]   ;;  %v1047_v53 = vld [vmem:[#allocation2 + $0x160] sm:$0xff]   ;;  %v1050_v56 = vld [vmem:[#allocation2 + $0x168] sm:$0xff]   ;;  %v1100_v15 = vmov 0.0  }
  0x23   :  { %932 = vmatprep.subr.bf16.mxu1 %v1020_v17  ;;  %v1048_v54 = vld [vmem:[#allocation2 + $0x120] sm:$0xff]   ;;  %v1051_v57 = vld [vmem:[#allocation2 + $0x128] sm:$0xff]   ;;  %v1053_v59 = vld [vmem:[#allocation2 + $0x170] sm:$0xff]  }
  0x24   :  { %v1049_v55 = vld [vmem:[#allocation2 + $0x1a0] sm:$0xff]   ;;  %v1052_v58 = vld [vmem:[#allocation2 + $0x1a8] sm:$0xff]   ;;  %v1054_v60 = vld [vmem:[#allocation2 + $0x130] sm:$0xff]  }
  0x25   :  { %911 = vmatpush3.bf16.msra.mxu0 %v1021_v18  ;;  %v40_v61 = vld [vmem:[%s1214_s0 + $0x28] sm:$0xff]  ;;  %v1055_v62 = vld [vmem:[#allocation2 + $0x1b0] sm:$0xff]   ;;  %v1056_v0 = vld [vmem:[#allocation2 + $0x178] sm:$0xff]  }
  0x26   :  { %933 = vmatpush3.bf16.msra.mxu1 %v1022_v19  ;;  %912 = vmatprep.subr.bf16.mxu0 %v1023_v20  ;;  %v48_v63 = vpack.c.bf16 %v40_v61, %v40_v61  ;;  %v1057_v1 = vld [vmem:[#allocation2 + $0x138] sm:$0xff]   ;;  %v39_v3 = vld [vmem:[%s1214_s0 + $0x20] sm:$0xff]  ;;  %v1060_v8 = vld [vmem:[#allocation2 + $0x1c8] sm:$0xff]  }
  0x27   :  { %934 = vmatprep.subr.bf16.mxu1 %v1024_v21  ;;  %v1058_v2 = vld [vmem:[#allocation2 + $0x1b8] sm:$0xff]   ;;  %v1059_v5 = vld [vmem:[#allocation2 + $0x1c0] sm:$0xff]   ;;  %v47_v7 = vpack.c.bf16 %v39_v3, %v39_v3  ;;  %v1061_v9 = vld [vmem:[#allocation2 + $0x1d0] sm:$0xff]  }
  0x28   :  { %v42_v4 = vld [vmem:[%s1214_s0 + $0x38] sm:$0xff]  ;;  %v1063_v11 = vld [vmem:[#allocation2 + $0x1e0] sm:$0xff]   ;;  %v41_v12 = vld [vmem:[%s1214_s0 + $0x30] sm:$0xff] }
  0x29   :  { %913 = vmatpush3.bf16.msra.mxu0 %v1025_v22  ;;  %v50_v6 = vpack.c.bf16 %v42_v4, %v42_v4  ;;  %v1062_v10 = vld [vmem:[#allocation2 + $0x1d8] sm:$0xff]   ;;  %v49_v13 = vpack.c.bf16 %v41_v12, %v41_v12  ;;  %v1064_v14 = vld [vmem:[%s1217_s3] sm:$0xff]   ;;  %v1065_v16 = vld [vmem:[%s1217_s3 + $0x8] sm:$0xff]  }
  0x2a   :  { %935 = vmatpush3.bf16.msra.mxu1 %v1026_v23  ;;  %914 = vmatprep.subr.bf16.mxu0 %v1027_v24  ;;  %v1066_v17 = vld [vmem:[%s1217_s3 + $0x10] sm:$0xff]   ;;  %v1067_v18 = vld [vmem:[%s1217_s3 + $0x18] sm:$0xff]   ;;  %v1068_v19 = vld [vmem:[%s1217_s3 + $0x20] sm:$0xff]  }
  0x2b   :  { %936 = vmatprep.subr.bf16.mxu1 %v1028_v25  ;;  %v1069_v20 = vld [vmem:[%s1217_s3 + $0x28] sm:$0xff]   ;;  %v1070_v21 = vld [vmem:[%s1217_s3 + $0x30] sm:$0xff]   ;;  %v1071_v22 = vld [vmem:[%s1217_s3 + $0x38] sm:$0xff]  }
  0x2c   :  { %v830_v25 = vld [vmem:[%s1216_s2] ss:$0 sm:$0xff] }
  0x2d   :  { %915 = vmatpush3.bf16.msra.mxu0 %v1029_v26 }
  0x2e   :  { %937 = vmatpush3.bf16.msra.mxu1 %v1030_v27  ;;  %916 = vmatprep.subr.bf16.mxu0 %v1031_v28 }
  0x2f   :  { %938 = vmatprep.subr.bf16.mxu1 %v1032_v29 }
  0x31   :  { %917 = vmatpush3.bf16.msra.mxu0 %v1033_v30 }
  0x32   :  { %939 = vmatpush3.bf16.msra.mxu1 %v1034_v31  ;;  %946 = vmatprep.subr.bf16.mxu0 %v1035_v40 }
  0x33   :  { %670 = vmatprep.subr.bf16.mxu1 %v1099_v41 }
  0x34   :  { %583 = vmatmul.mubr.bf16.vlgmr.msra.gmra.mrb[0].mxu0 %v43_v37 }
  0x35   :  { %623 = vmatmul.mubr.bf16.vlgmr.msra.gmra.mrb[0].mxu1 %v45_v39  ;;  %947 = vmatpush3.bf16.msra.mxu0 %v1036_v42 }
  0x36   :  { %671 = vmatpush1.bf16.msra.mxu1 %v1037_v43  ;;  %948 = vmatprep.subr.bf16.mxu0 %v1038_v44 }
  0x37   :  { %672 = vmatprep.subr.bf16.mxu1 %v1099_v41  ;;  %662 = vmatprep.mubr.bf16.mxu0 %v48_v63 }
  0x38   :  { %892 = vmatprep.mubr.msk.bf16.mxu1 %vm546_vm0, %v50_v6 }
  0x39   :  { %949 = vmatpush3.bf16.msra.mxu0 %v1039_v45 }
  0x3a   :  { %673 = vmatpush1.bf16.msra.mxu1 %v1040_v46  ;;  %950 = vmatprep.subr.bf16.mxu0 %v1041_v47 }
  0x3b   :  { %674 = vmatprep.subr.bf16.mxu1 %v1099_v41 }
  0x3d   :  { %951 = vmatpush3.bf16.msra.mxu0 %v1042_v48 }
  0x3e   :  { %675 = vmatpush1.bf16.msra.mxu1 %v1043_v49  ;;  %952 = vmatprep.subr.bf16.mxu0 %v1044_v50  ;;  %v893_v49 = vld [vmem:[%s1218_s4] ss:$0 sm:$0xff] }
  0x3f   :  { %676 = vmatprep.subr.bf16.mxu1 %v1099_v41 }
  0x41   :  { %953 = vmatpush3.bf16.msra.mxu0 %v1045_v51 }
  0x42   :  { %677 = vmatpush1.bf16.msra.mxu1 %v1046_v52  ;;  %954 = vmatprep.subr.bf16.mxu0 %v1047_v53 }
  0x43   :  { %678 = vmatprep.subr.bf16.mxu1 %v1099_v41 }
  0x45   :  { %955 = vmatpush3.bf16.msra.mxu0 %v1048_v54 }
  0x46   :  { %679 = vmatpush1.bf16.msra.mxu1 %v1049_v55  ;;  %956 = vmatprep.subr.bf16.mxu0 %v1050_v56 }
  0x47   :  { %680 = vmatprep.subr.bf16.mxu1 %v1099_v41 }
  0x49   :  { %957 = vmatpush3.bf16.msra.mxu0 %v1051_v57 }
  0x4a   :  { %681 = vmatpush1.bf16.msra.mxu1 %v1052_v58  ;;  %958 = vmatprep.subr.bf16.mxu0 %v1053_v59 }
  0x4b   :  { %682 = vmatprep.subr.bf16.mxu1 %v1099_v41 }
  0x4d   :  { %959 = vmatpush3.bf16.msra.mxu0 %v1054_v60 }
  0x4e   :  { %683 = vmatpush1.bf16.msra.mxu1 %v1055_v62  ;;  %960 = vmatprep.subr.bf16.mxu0 %v1056_v0 }
  0x4f   :  { %684 = vmatprep.subr.bf16.mxu1 %v1099_v41 }
  0x51   :  { %961 = vmatpush3.bf16.msra.mxu0 %v1057_v1 }
  0x52   :  { %685 = vmatpush1.bf16.msra.mxu1 %v1058_v2  ;;  %977 = vmatprep.subr.bf16.mxu0 %v1100_v15 }
  0x53   :  { %686 = vmatprep.subr.bf16.mxu1 %v1099_v41 }
  0x54   :  { %663 = vmatmul.mubr.bf16.vlgmr.msra.gmra.mrb[4].mxu0 %v47_v7 }
  0x55   :  { %978 = vmatpush3.bf16.msra.mxu0 %v1064_v14  ;;  %993 = vmatprep.mubr.msk.bf16.mxu0 %vm1101_vm1, %v1100_v15 }
  0x56   :  { %687 = vmatpush1.bf16.msra.mxu1 %v1059_v5  ;;  %979 = vmatprep.subr.bf16.mxu0 %v1100_v15 }
  0x57   :  { %688 = vmatprep.subr.bf16.mxu1 %v1099_v41 }
  0x59   :  { %980 = vmatpush3.bf16.msra.mxu0 %v1065_v16 }
  0x5a   :  { %689 = vmatpush1.bf16.msra.mxu1 %v1060_v8  ;;  %981 = vmatprep.subr.bf16.mxu0 %v1100_v15 }
  0x5b   :  { %690 = vmatprep.subr.bf16.mxu1 %v1099_v41 }
  0x5d   :  { %982 = vmatpush3.bf16.msra.mxu0 %v1066_v17 }
  0x5e   :  { %691 = vmatpush1.bf16.msra.mxu1 %v1061_v9  ;;  %983 = vmatprep.subr.bf16.mxu0 %v1100_v15 }
  0x5f   :  { %692 = vmatprep.subr.bf16.mxu1 %v1099_v41 }
  0x61   :  { %984 = vmatpush3.bf16.msra.mxu0 %v1067_v18 }
  0x62   :  { %693 = vmatpush1.bf16.msra.mxu1 %v1062_v10  ;;  %985 = vmatprep.subr.bf16.mxu0 %v1100_v15 }
  0x63   :  { %694 = vmatprep.subr.bf16.mxu1 %v1099_v41 }
  0x65   :  { %986 = vmatpush3.bf16.msra.mxu0 %v1068_v19 }
  0x66   :  { %695 = vmatpush1.bf16.msra.mxu1 %v1063_v11  ;;  %987 = vmatprep.subr.bf16.mxu0 %v1100_v15 }
  0x69   :  { %703 = vmatmul.mubr.bf16.vlgmr.msra.gmra.mrb[4].mxu1 %v49_v13  ;;  %988 = vmatpush3.bf16.msra.mxu0 %v1069_v20 }
  0x6a   :  { %989 = vmatprep.subr.bf16.mxu0 %v1100_v15 }
  0x6d   :  { %990 = vmatpush3.bf16.msra.mxu0 %v1070_v21 }
  0x6e   :  { %991 = vmatprep.subr.bf16.mxu0 %v1100_v15 }
  0x71   :  { %992 = vmatpush3.bf16.msra.mxu0 %v1071_v22 }
 0x107   :  { %v918_v23 = vpop.f32.mrb[0].mxu0 }
 0x108   :  { %v940_v24 = vpop.f32.mrb[0].mxu1  ;;  %v919_v26 = vpop.f32.mrb[1].mxu0 }
 0x109   :  { %v941_v27 = vpop.f32.mrb[1].mxu1  ;;  %v920_v28 = vadd.f32 %v919_v26, %v918_v23  ;;  %v921_v31 = vpop.f32.mrb[2].mxu0 }
 0x10a   :  { %v942_v29 = vadd.f32 %v941_v27, %v940_v24  ;;  %v943_v30 = vpop.f32.mrb[2].mxu1  ;;  %v922_v33 = vpop.f32.mrb[3].mxu0 }
 0x10b   :  { %v944_v32 = vpop.f32.mrb[3].mxu1  ;;  %v585_v34 = vadd.f32 %v920_v28, %v830_v25 }
 0x10d   :  { %v625_v35 = vadd.f32 %v942_v29, %v585_v34 }
 0x127   :  { %v962_v36 = vpop.f32.mrb[4].mxu0 }
 0x128   :  { %v963_v37 = vpop.f32.mrb[5].mxu0 }
 0x129   :  { %v964_v38 = vadd.f32 %v963_v37, %v962_v36  ;;  %v965_v39 = vpop.f32.mrb[6].mxu0 }
 0x12a   :  { %v966_v40 = vpop.f32.mrb[7].mxu0 }
 0x12b   :  { %v665_v41 = vadd.f32 %v964_v38, %v625_v35 }
 0x13c   :  { %v704_v42 = vpop.f32.mrb[4].mxu1 }
 0x13d   :  { %v705_v43 = vadd.f32 %v704_v42, %v665_v41  ;;  %v706_v44 = vpop.f32.mrb[5].mxu1 }
 0x13e   :  { %v707_v45 = vpop.f32.mrb[6].mxu1 }
 0x13f   :  { %v710_v46 = vmax.f32 %v705_v43, 0.0  ;;  %v708_v47 = vpop.f32.mrb[7].mxu1 }
 0x141   :  { %v711_v48 = vpack.c.bf16 %v710_v46, %v710_v46 }
 0x143   :  { %994 = vmatmul.mubr.bf16.vlgmr.msra.gmra.mrb[8].mxu0 %v711_v48 }
 0x216   :  { %v817_v50 = vpop.f32.mrb[8].mxu0 }
 0x217   :  { %v818_v51 = vadd.f32 %v893_v49, %v817_v50  ;;  %v995_v52 = vpop.f32.mrb[9].mxu0 }
 0x218   :  { %v820_v53 = vpop.f32.mrb[10].mxu0 }
 0x219   :  { %824 = vst.msk [vmem:[%s1219_s5] sm:$0xff] %vm823_vm2, %v818_v51  ;;  %v996_v54 = vpop.f32.mrb[11].mxu0 }
 0x21a   :  { %829 = vsyncpa [#allocation3], 1 }

</bundles_post_ra>
